<compile_context>
chip_gen: v6e
topology: v6e:2x2x1
jax: 0.10.0
libtpu: 0.0.40
codegen_flags: <defaults>
</compile_context>

<pallas_src>
import functools
import math

import jax
import jax.numpy as jnp
from jax import lax
from jax.experimental import pallas as pl
from jax.experimental.pallas import tpu as pltpu

# Contract the last dim of both operands: x @ W.T with W kept in [out, in] layout.
_CONTRACT_LAST = (((1,), (1,)), ((), ()))


def _mha_kernel(q_ref, k_ref, v_ref,
                wq_ref, bq_ref, wk_ref, bk_ref, wv_ref, bv_ref, wo_ref, bo_ref,
                out_ref, attn_ref,
                att_scratch,
                *, num_heads: int, head_dim: int):
    f32 = jnp.float32
    q = q_ref[0]          # (Tq, E)
    k = k_ref[0]          # (S,  E)
    v = v_ref[0]          # (S,  E)

    # Projections: x @ W.T with the transpose folded into the MXU operand fetch.
    Q = lax.dot_general(q, wq_ref[...], _CONTRACT_LAST,
                        preferred_element_type=f32) + bq_ref[...]
    K = lax.dot_general(k, wk_ref[...], _CONTRACT_LAST,
                        preferred_element_type=f32) + bk_ref[...]
    V = lax.dot_general(v, wv_ref[...], _CONTRACT_LAST,
                        preferred_element_type=f32) + bv_ref[...]

    scale = 1.0 / math.sqrt(head_dim)

    # num_heads is small & static -> unrolled Python loop.
    for h in range(num_heads):
        lo = h * head_dim
        hi = lo + head_dim
        Qh = Q[:, lo:hi]                 # (Tq, hd)
        Kh = K[:, lo:hi]                 # (S,  hd)
        Vh = V[:, lo:hi]                 # (S,  hd)

        # scores = Qh @ Kh.T without materializing Kh.T (transposed contraction).
        s = lax.dot_general(Qh, Kh, _CONTRACT_LAST,
                            preferred_element_type=f32) * scale      # (Tq, S)
        s = s - jnp.max(s, axis=-1, keepdims=True)
        e = jnp.exp(s)
        inv = pl.reciprocal(jnp.sum(e, axis=-1, keepdims=True), approx=True)
        a = e * inv                                                   # softmax (Tq, S)

        # Accumulate the head-average attention directly in the output ref (VMEM).
        if h == 0:
            attn_ref[0] = a
        else:
            attn_ref[0] = attn_ref[0] + a

        # Write the attended head slice straight into the (Tq, E) scratch.
        att_scratch[:, pl.ds(lo, head_dim)] = jnp.dot(
            a, Vh, preferred_element_type=f32)

    out = lax.dot_general(att_scratch[...], wo_ref[...], _CONTRACT_LAST,
                          preferred_element_type=f32) + bo_ref[...]
    out_ref[0] = out.astype(out_ref.dtype)
    attn_ref[0] = attn_ref[0] * jnp.float32(1.0 / num_heads)


def _choose_q_tile(S: int, max_tile: int = 256) -> int:
    """Largest query tile <= max_tile that divides S (multiple of 8 when tiling)."""
    if S <= max_tile:
        return S
    for t in range(max_tile, 7, -8):
        if t % 8 == 0 and S % t == 0:
            return t
    return S  # fallback: full-S tile


def interpretable_mha(q, k, v, params, *, num_heads: int, q_tile: int | None = None,
                      vmem_limit_bytes: int = 48 * 1024 * 1024):
    """params: dict with wq, bq, wk, bk, wv, bv, wo, bo.
    Weights are stored PyTorch-style [out, in]; biases [out]."""
    B, S, E = q.shape
    head_dim = E // num_heads
    assert head_dim * num_heads == E

    if q_tile is None:
        q_tile = _choose_q_tile(S)
    assert S % q_tile == 0
    num_q_tiles = S // q_tile

    # Weights stay [out, in] (no host-side .T copies); biases made 2-D (1, E).
    wq, wk, wv, wo = params["wq"], params["wk"], params["wv"], params["wo"]
    bq = params["bq"].reshape(1, E)
    bk = params["bk"].reshape(1, E)
    bv = params["bv"].reshape(1, E)
    bo = params["bo"].reshape(1, E)

    q_spec = pl.BlockSpec((1, q_tile, E), lambda b, qi: (b, qi, 0))
    kv_spec = pl.BlockSpec((1, S, E), lambda b, qi: (b, 0, 0))
    w_spec = pl.BlockSpec((E, E), lambda b, qi: (0, 0))
    b_spec = pl.BlockSpec((1, E), lambda b, qi: (0, 0))

    kernel = functools.partial(_mha_kernel, num_heads=num_heads, head_dim=head_dim)

    out, attn = pl.pallas_call(
        kernel,
        out_shape=(jax.ShapeDtypeStruct((B, S, E), q.dtype),
                   jax.ShapeDtypeStruct((B, S, S), jnp.float32)),
        grid_spec=pltpu.PrefetchScalarGridSpec(
            num_scalar_prefetch=0,
            grid=(B, num_q_tiles),
            in_specs=[q_spec, kv_spec, kv_spec,
                      w_spec, b_spec, w_spec, b_spec,
                      w_spec, b_spec, w_spec, b_spec],
            out_specs=(pl.BlockSpec((1, q_tile, E), lambda b, qi: (b, qi, 0)),
                       pl.BlockSpec((1, q_tile, S), lambda b, qi: (b, qi, 0))),
            scratch_shapes=[pltpu.VMEM((q_tile, E), jnp.float32)],
        ),
        compiler_params=pltpu.CompilerParams(
            dimension_semantics=("parallel", "parallel"),
            vmem_limit_bytes=vmem_limit_bytes),
    )(q, k, v, wq, bq, wk, bk, wv, bv, wo, bo)
    return out, attn


def _reference(q, k, v, params, *, num_heads: int):
    """Pure-JAX reference mirroring the PyTorch forward (eval mode)."""
    B, S, E = q.shape
    hd = E // num_heads
    Q = q @ params["wq"].T + params["bq"]
    K = k @ params["wk"].T + params["bk"]
    V = v @ params["wv"].T + params["bv"]
    Q = Q.reshape(B, S, num_heads, hd).transpose(0, 2, 1, 3)
    K = K.reshape(B, S, num_heads, hd).transpose(0, 2, 1, 3)
    V = V.reshape(B, S, num_heads, hd).transpose(0, 2, 1, 3)
    scores = jnp.einsum("bhqd,bhkd->bhqk", Q, K) / math.sqrt(hd)
    attn = jax.nn.softmax(scores, axis=-1)
    attended = jnp.einsum("bhqk,bhkd->bhqd", attn, V)
    attended = attended.transpose(0, 2, 1, 3).reshape(B, S, E)
    out = attended @ params["wo"].T + params["bo"]
    return out, attn.mean(axis=1)


if __name__ == "__main__":
    B, S, E, H = 2, 8, 32, 4

    key = jax.random.PRNGKey(0)
    keys = jax.random.split(key, 12)
    scale = 1.0 / math.sqrt(E)
    params = {
        "wq": jax.random.uniform(keys[0], (E, E), jnp.float32, -scale, scale),
        "bq": jax.random.uniform(keys[1], (E,), jnp.float32, -scale, scale),
        "wk": jax.random.uniform(keys[2], (E, E), jnp.float32, -scale, scale),
        "bk": jax.random.uniform(keys[3], (E,), jnp.float32, -scale, scale),
        "wv": jax.random.uniform(keys[4], (E, E), jnp.float32, -scale, scale),
        "bv": jax.random.uniform(keys[5], (E,), jnp.float32, -scale, scale),
        "wo": jax.random.uniform(keys[6], (E, E), jnp.float32, -scale, scale),
        "bo": jax.random.uniform(keys[7], (E,), jnp.float32, -scale, scale),
    }
    q = jax.random.normal(keys[8], (B, S, E), jnp.float32)
    k = jax.random.normal(keys[9], (B, S, E), jnp.float32)
    v = jax.random.normal(keys[10], (B, S, E), jnp.float32)

    out, avg_attn = interpretable_mha(q, k, v, params, num_heads=H)
    jax.block_until_ready((out, avg_attn))

    ref_out, ref_attn = _reference(q, k, v, params, num_heads=H)
    assert out.shape == (B, S, E) and avg_attn.shape == (B, S, S)
    # Tolerances account for the EUP approximate reciprocal in the softmax denom.
    assert jnp.allclose(out, ref_out, atol=2e-3, rtol=2e-3)
    assert jnp.allclose(avg_attn, ref_attn, atol=2e-3, rtol=2e-3)

    print("KERNEL_OK")
</pallas_src>

<mosaic_0001>
module attributes {stable_mosaic.version = 11 : i64} {
  func.func @_mha_kernel(%arg0: i32, %arg1: i32, %arg2: memref<1x8x32xf32, #tpu.memory_space<vmem>>, %arg3: memref<1x8x32xf32, #tpu.memory_space<vmem>>, %arg4: memref<1x8x32xf32, #tpu.memory_space<vmem>>, %arg5: memref<32x32xf32, #tpu.memory_space<vmem>>, %arg6: memref<1x32xf32, #tpu.memory_space<vmem>>, %arg7: memref<32x32xf32, #tpu.memory_space<vmem>>, %arg8: memref<1x32xf32, #tpu.memory_space<vmem>>, %arg9: memref<32x32xf32, #tpu.memory_space<vmem>>, %arg10: memref<1x32xf32, #tpu.memory_space<vmem>>, %arg11: memref<32x32xf32, #tpu.memory_space<vmem>>, %arg12: memref<1x32xf32, #tpu.memory_space<vmem>>, %arg13: memref<1x8x32xf32, #tpu.memory_space<vmem>>, %arg14: memref<1x8x8xf32, #tpu.memory_space<vmem>>, %arg15: memref<8x32xf32, #tpu.memory_space<vmem>>) attributes {dimension_semantics = [#tpu.dimension_semantics<parallel>, #tpu.dimension_semantics<parallel>], iteration_bounds = array<i64: 2, 1>, scalar_prefetch = 0 : i64, scratch_operands = 1 : i64, tpu.core_type = #tpu.core_type<tc>, window_params = [{transform_indices = @transform_0, window_bounds = array<i64: 1, 8, 32>}, {transform_indices = @transform_1, window_bounds = array<i64: 1, 8, 32>}, {transform_indices = @transform_2, window_bounds = array<i64: 1, 8, 32>}, {pipeline_mode = #tpu.pipeline_mode<synchronous>, transform_indices = @transform_3, window_bounds = array<i64: 32, 32>}, {pipeline_mode = #tpu.pipeline_mode<synchronous>, transform_indices = @transform_4, window_bounds = array<i64: 1, 32>}, {pipeline_mode = #tpu.pipeline_mode<synchronous>, transform_indices = @transform_5, window_bounds = array<i64: 32, 32>}, {pipeline_mode = #tpu.pipeline_mode<synchronous>, transform_indices = @transform_6, window_bounds = array<i64: 1, 32>}, {pipeline_mode = #tpu.pipeline_mode<synchronous>, transform_indices = @transform_7, window_bounds = array<i64: 32, 32>}, {pipeline_mode = #tpu.pipeline_mode<synchronous>, transform_indices = @transform_8, window_bounds = array<i64: 1, 32>}, {pipeline_mode = #tpu.pipeline_mode<synchronous>, transform_indices = @transform_9, window_bounds = array<i64: 32, 32>}, {pipeline_mode = #tpu.pipeline_mode<synchronous>, transform_indices = @transform_10, window_bounds = array<i64: 1, 32>}, {transform_indices = @transform_11, window_bounds = array<i64: 1, 8, 32>}, {transform_indices = @transform_12, window_bounds = array<i64: 1, 8, 8>}]} {
    %c0 = arith.constant 0 : index
    %c0_0 = arith.constant 0 : index
    %c0_1 = arith.constant 0 : index
    %0 = vector.load %arg2[%c0, %c0_0, %c0_1] : memref<1x8x32xf32, #tpu.memory_space<vmem>>, vector<1x8x32xf32>
    %1 = vector.shape_cast %0 : vector<1x8x32xf32> to vector<8x32xf32>
    %c0_2 = arith.constant 0 : index
    %c0_3 = arith.constant 0 : index
    %c0_4 = arith.constant 0 : index
    %2 = vector.load %arg3[%c0_2, %c0_3, %c0_4] : memref<1x8x32xf32, #tpu.memory_space<vmem>>, vector<1x8x32xf32>
    %3 = vector.shape_cast %2 : vector<1x8x32xf32> to vector<8x32xf32>
    %c0_5 = arith.constant 0 : index
    %c0_6 = arith.constant 0 : index
    %c0_7 = arith.constant 0 : index
    %4 = vector.load %arg4[%c0_5, %c0_6, %c0_7] : memref<1x8x32xf32, #tpu.memory_space<vmem>>, vector<1x8x32xf32>
    %5 = vector.shape_cast %4 : vector<1x8x32xf32> to vector<8x32xf32>
    %c0_8 = arith.constant 0 : index
    %c0_9 = arith.constant 0 : index
    %6 = vector.load %arg5[%c0_8, %c0_9] : memref<32x32xf32, #tpu.memory_space<vmem>>, vector<32x32xf32>
    %cst = arith.constant dense<0.000000e+00> : vector<8x32xf32>
    %7 = tpu.matmul %1, %6, %cst {dimension_numbers = #tpu.dot_dimension_numbers<[1], [1], [0], [0], [0, 0, 1, 0], [], []>} : vector<8x32xf32>, vector<32x32xf32>, vector<8x32xf32> -> vector<8x32xf32>
    %c0_10 = arith.constant 0 : index
    %c0_11 = arith.constant 0 : index
    %8 = vector.load %arg6[%c0_10, %c0_11] : memref<1x32xf32, #tpu.memory_space<vmem>>, vector<1x32xf32>
    %9 = vector.broadcast %8 : vector<1x32xf32> to vector<8x32xf32>
    %10 = arith.addf %7, %9 : vector<8x32xf32>
    %c0_12 = arith.constant 0 : index
    %c0_13 = arith.constant 0 : index
    %11 = vector.load %arg7[%c0_12, %c0_13] : memref<32x32xf32, #tpu.memory_space<vmem>>, vector<32x32xf32>
    %cst_14 = arith.constant dense<0.000000e+00> : vector<8x32xf32>
    %12 = tpu.matmul %3, %11, %cst_14 {dimension_numbers = #tpu.dot_dimension_numbers<[1], [1], [0], [0], [0, 0, 1, 0], [], []>} : vector<8x32xf32>, vector<32x32xf32>, vector<8x32xf32> -> vector<8x32xf32>
    %c0_15 = arith.constant 0 : index
    %c0_16 = arith.constant 0 : index
    %13 = vector.load %arg8[%c0_15, %c0_16] : memref<1x32xf32, #tpu.memory_space<vmem>>, vector<1x32xf32>
    %14 = vector.broadcast %13 : vector<1x32xf32> to vector<8x32xf32>
    %15 = arith.addf %12, %14 : vector<8x32xf32>
    %c0_17 = arith.constant 0 : index
    %c0_18 = arith.constant 0 : index
    %16 = vector.load %arg9[%c0_17, %c0_18] : memref<32x32xf32, #tpu.memory_space<vmem>>, vector<32x32xf32>
    %cst_19 = arith.constant dense<0.000000e+00> : vector<8x32xf32>
    %17 = tpu.matmul %5, %16, %cst_19 {dimension_numbers = #tpu.dot_dimension_numbers<[1], [1], [0], [0], [0, 0, 1, 0], [], []>} : vector<8x32xf32>, vector<32x32xf32>, vector<8x32xf32> -> vector<8x32xf32>
    %c0_20 = arith.constant 0 : index
    %c0_21 = arith.constant 0 : index
    %18 = vector.load %arg10[%c0_20, %c0_21] : memref<1x32xf32, #tpu.memory_space<vmem>>, vector<1x32xf32>
    %19 = vector.broadcast %18 : vector<1x32xf32> to vector<8x32xf32>
    %20 = arith.addf %17, %19 : vector<8x32xf32>
    %21 = vector.extract_strided_slice %10 {offsets = [0, 0], sizes = [8, 8], strides = [1, 1]} : vector<8x32xf32> to vector<8x8xf32>
    %22 = vector.extract_strided_slice %15 {offsets = [0, 0], sizes = [8, 8], strides = [1, 1]} : vector<8x32xf32> to vector<8x8xf32>
    %23 = vector.extract_strided_slice %20 {offsets = [0, 0], sizes = [8, 8], strides = [1, 1]} : vector<8x32xf32> to vector<8x8xf32>
    %cst_22 = arith.constant dense<0.000000e+00> : vector<8x8xf32>
    %24 = tpu.matmul %21, %22, %cst_22 {dimension_numbers = #tpu.dot_dimension_numbers<[1], [1], [0], [0], [0, 0, 1, 0], [], []>} : vector<8x8xf32>, vector<8x8xf32>, vector<8x8xf32> -> vector<8x8xf32>
    %cst_23 = arith.constant 0.353553385 : f32
    %25 = vector.broadcast %cst_23 : f32 to vector<8x8xf32>
    %26 = arith.mulf %24, %25 : vector<8x8xf32>
    %cst_24 = arith.constant dense<0xFF800000> : vector<8xf32>
    %27 = vector.multi_reduction <maximumf>, %26, %cst_24 [1] : vector<8x8xf32> to vector<8xf32>
    %28 = vector.shape_cast %27 : vector<8xf32> to vector<8x1xf32>
    %29 = vector.broadcast %28 : vector<8x1xf32> to vector<8x8xf32>
    %30 = arith.subf %26, %29 : vector<8x8xf32>
    %31 = math.exp %30 : vector<8x8xf32>
    %cst_25 = arith.constant dense<0.000000e+00> : vector<8xf32>
    %32 = vector.multi_reduction <add>, %31, %cst_25 [1] : vector<8x8xf32> to vector<8xf32>
    %33 = vector.shape_cast %32 : vector<8xf32> to vector<8x1xf32>
    %34 = tpu.reciprocal %33 {approx = true} : vector<8x1xf32> -> vector<8x1xf32>
    %35 = vector.broadcast %34 : vector<8x1xf32> to vector<8x8xf32>
    %36 = arith.mulf %31, %35 : vector<8x8xf32>
    %c0_26 = arith.constant 0 : index
    %c0_27 = arith.constant 0 : index
    %c0_28 = arith.constant 0 : index
    %37 = vector.load %arg14[%c0_26, %c0_27, %c0_28] : memref<1x8x8xf32, #tpu.memory_space<vmem>>, vector<1x8x8xf32>
    %38 = vector.shape_cast %37 : vector<1x8x8xf32> to vector<8x8xf32>
    %39 = vector.shape_cast %36 : vector<8x8xf32> to vector<1x8x8xf32>
    tpu.vector_store %arg14[%c0_26, %c0_27, %c0_28], %39 {strides = array<i32>} : memref<1x8x8xf32, #tpu.memory_space<vmem>>, vector<1x8x8xf32>,
    %cst_29 = arith.constant dense<0.000000e+00> : vector<8x8xf32>
    %40 = tpu.matmul %36, %23, %cst_29 {dimension_numbers = #tpu.dot_dimension_numbers<[1], [0], [0], [1], [0, 0, 1, 1], [], []>} : vector<8x8xf32>, vector<8x8xf32>, vector<8x8xf32> -> vector<8x8xf32>
    %c0_30 = arith.constant 0 : index
    %c0_31 = arith.constant 0 : index
    %41 = vector.load %arg15[%c0_30, %c0_31] : memref<8x32xf32, #tpu.memory_space<vmem>>, vector<8x8xf32>
    tpu.vector_store %arg15[%c0_30, %c0_31], %40 {strides = array<i32>} : memref<8x32xf32, #tpu.memory_space<vmem>>, vector<8x8xf32>,
    %42 = vector.extract_strided_slice %10 {offsets = [0, 8], sizes = [8, 8], strides = [1, 1]} : vector<8x32xf32> to vector<8x8xf32>
    %43 = vector.extract_strided_slice %15 {offsets = [0, 8], sizes = [8, 8], strides = [1, 1]} : vector<8x32xf32> to vector<8x8xf32>
    %44 = vector.extract_strided_slice %20 {offsets = [0, 8], sizes = [8, 8], strides = [1, 1]} : vector<8x32xf32> to vector<8x8xf32>
    %cst_32 = arith.constant dense<0.000000e+00> : vector<8x8xf32>
    %45 = tpu.matmul %42, %43, %cst_32 {dimension_numbers = #tpu.dot_dimension_numbers<[1], [1], [0], [0], [0, 0, 1, 0], [], []>} : vector<8x8xf32>, vector<8x8xf32>, vector<8x8xf32> -> vector<8x8xf32>
    %cst_33 = arith.constant 0.353553385 : f32
    %46 = vector.broadcast %cst_33 : f32 to vector<8x8xf32>
    %47 = arith.mulf %45, %46 : vector<8x8xf32>
    %cst_34 = arith.constant dense<0xFF800000> : vector<8xf32>
    %48 = vector.multi_reduction <maximumf>, %47, %cst_34 [1] : vector<8x8xf32> to vector<8xf32>
    %49 = vector.shape_cast %48 : vector<8xf32> to vector<8x1xf32>
    %50 = vector.broadcast %49 : vector<8x1xf32> to vector<8x8xf32>
    %51 = arith.subf %47, %50 : vector<8x8xf32>
    %52 = math.exp %51 : vector<8x8xf32>
    %cst_35 = arith.constant dense<0.000000e+00> : vector<8xf32>
    %53 = vector.multi_reduction <add>, %52, %cst_35 [1] : vector<8x8xf32> to vector<8xf32>
    %54 = vector.shape_cast %53 : vector<8xf32> to vector<8x1xf32>
    %55 = tpu.reciprocal %54 {approx = true} : vector<8x1xf32> -> vector<8x1xf32>
    %56 = vector.broadcast %55 : vector<8x1xf32> to vector<8x8xf32>
    %57 = arith.mulf %52, %56 : vector<8x8xf32>
    %c0_36 = arith.constant 0 : index
    %c0_37 = arith.constant 0 : index
    %c0_38 = arith.constant 0 : index
    %58 = vector.load %arg14[%c0_36, %c0_37, %c0_38] : memref<1x8x8xf32, #tpu.memory_space<vmem>>, vector<1x8x8xf32>
    %59 = vector.shape_cast %58 : vector<1x8x8xf32> to vector<8x8xf32>
    %60 = arith.addf %59, %57 : vector<8x8xf32>
    %c0_39 = arith.constant 0 : index
    %c0_40 = arith.constant 0 : index
    %c0_41 = arith.constant 0 : index
    %61 = vector.load %arg14[%c0_39, %c0_40, %c0_41] : memref<1x8x8xf32, #tpu.memory_space<vmem>>, vector<1x8x8xf32>
    %62 = vector.shape_cast %61 : vector<1x8x8xf32> to vector<8x8xf32>
    %63 = vector.shape_cast %60 : vector<8x8xf32> to vector<1x8x8xf32>
    tpu.vector_store %arg14[%c0_39, %c0_40, %c0_41], %63 {strides = array<i32>} : memref<1x8x8xf32, #tpu.memory_space<vmem>>, vector<1x8x8xf32>,
    %cst_42 = arith.constant dense<0.000000e+00> : vector<8x8xf32>
    %64 = tpu.matmul %57, %44, %cst_42 {dimension_numbers = #tpu.dot_dimension_numbers<[1], [0], [0], [1], [0, 0, 1, 1], [], []>} : vector<8x8xf32>, vector<8x8xf32>, vector<8x8xf32> -> vector<8x8xf32>
    %c0_43 = arith.constant 0 : index
    %c8 = arith.constant 8 : index
    %65 = vector.load %arg15[%c0_43, %c8] : memref<8x32xf32, #tpu.memory_space<vmem>>, vector<8x8xf32>
    tpu.vector_store %arg15[%c0_43, %c8], %64 {strides = array<i32>} : memref<8x32xf32, #tpu.memory_space<vmem>>, vector<8x8xf32>,
    %66 = vector.extract_strided_slice %10 {offsets = [0, 16], sizes = [8, 8], strides = [1, 1]} : vector<8x32xf32> to vector<8x8xf32>
    %67 = vector.extract_strided_slice %15 {offsets = [0, 16], sizes = [8, 8], strides = [1, 1]} : vector<8x32xf32> to vector<8x8xf32>
    %68 = vector.extract_strided_slice %20 {offsets = [0, 16], sizes = [8, 8], strides = [1, 1]} : vector<8x32xf32> to vector<8x8xf32>
    %cst_44 = arith.constant dense<0.000000e+00> : vector<8x8xf32>
    %69 = tpu.matmul %66, %67, %cst_44 {dimension_numbers = #tpu.dot_dimension_numbers<[1], [1], [0], [0], [0, 0, 1, 0], [], []>} : vector<8x8xf32>, vector<8x8xf32>, vector<8x8xf32> -> vector<8x8xf32>
    %cst_45 = arith.constant 0.353553385 : f32
    %70 = vector.broadcast %cst_45 : f32 to vector<8x8xf32>
    %71 = arith.mulf %69, %70 : vector<8x8xf32>
    %cst_46 = arith.constant dense<0xFF800000> : vector<8xf32>
    %72 = vector.multi_reduction <maximumf>, %71, %cst_46 [1] : vector<8x8xf32> to vector<8xf32>
    %73 = vector.shape_cast %72 : vector<8xf32> to vector<8x1xf32>
    %74 = vector.broadcast %73 : vector<8x1xf32> to vector<8x8xf32>
    %75 = arith.subf %71, %74 : vector<8x8xf32>
    %76 = math.exp %75 : vector<8x8xf32>
    %cst_47 = arith.constant dense<0.000000e+00> : vector<8xf32>
    %77 = vector.multi_reduction <add>, %76, %cst_47 [1] : vector<8x8xf32> to vector<8xf32>
    %78 = vector.shape_cast %77 : vector<8xf32> to vector<8x1xf32>
    %79 = tpu.reciprocal %78 {approx = true} : vector<8x1xf32> -> vector<8x1xf32>
    %80 = vector.broadcast %79 : vector<8x1xf32> to vector<8x8xf32>
    %81 = arith.mulf %76, %80 : vector<8x8xf32>
    %c0_48 = arith.constant 0 : index
    %c0_49 = arith.constant 0 : index
    %c0_50 = arith.constant 0 : index
    %82 = vector.load %arg14[%c0_48, %c0_49, %c0_50] : memref<1x8x8xf32, #tpu.memory_space<vmem>>, vector<1x8x8xf32>
    %83 = vector.shape_cast %82 : vector<1x8x8xf32> to vector<8x8xf32>
    %84 = arith.addf %83, %81 : vector<8x8xf32>
    %c0_51 = arith.constant 0 : index
    %c0_52 = arith.constant 0 : index
    %c0_53 = arith.constant 0 : index
    %85 = vector.load %arg14[%c0_51, %c0_52, %c0_53] : memref<1x8x8xf32, #tpu.memory_space<vmem>>, vector<1x8x8xf32>
    %86 = vector.shape_cast %85 : vector<1x8x8xf32> to vector<8x8xf32>
    %87 = vector.shape_cast %84 : vector<8x8xf32> to vector<1x8x8xf32>
    tpu.vector_store %arg14[%c0_51, %c0_52, %c0_53], %87 {strides = array<i32>} : memref<1x8x8xf32, #tpu.memory_space<vmem>>, vector<1x8x8xf32>,
    %cst_54 = arith.constant dense<0.000000e+00> : vector<8x8xf32>
    %88 = tpu.matmul %81, %68, %cst_54 {dimension_numbers = #tpu.dot_dimension_numbers<[1], [0], [0], [1], [0, 0, 1, 1], [], []>} : vector<8x8xf32>, vector<8x8xf32>, vector<8x8xf32> -> vector<8x8xf32>
    %c0_55 = arith.constant 0 : index
    %c16 = arith.constant 16 : index
    %89 = vector.load %arg15[%c0_55, %c16] : memref<8x32xf32, #tpu.memory_space<vmem>>, vector<8x8xf32>
    tpu.vector_store %arg15[%c0_55, %c16], %88 {strides = array<i32>} : memref<8x32xf32, #tpu.memory_space<vmem>>, vector<8x8xf32>,
    %90 = vector.extract_strided_slice %10 {offsets = [0, 24], sizes = [8, 8], strides = [1, 1]} : vector<8x32xf32> to vector<8x8xf32>
    %91 = vector.extract_strided_slice %15 {offsets = [0, 24], sizes = [8, 8], strides = [1, 1]} : vector<8x32xf32> to vector<8x8xf32>
    %92 = vector.extract_strided_slice %20 {offsets = [0, 24], sizes = [8, 8], strides = [1, 1]} : vector<8x32xf32> to vector<8x8xf32>
    %cst_56 = arith.constant dense<0.000000e+00> : vector<8x8xf32>
    %93 = tpu.matmul %90, %91, %cst_56 {dimension_numbers = #tpu.dot_dimension_numbers<[1], [1], [0], [0], [0, 0, 1, 0], [], []>} : vector<8x8xf32>, vector<8x8xf32>, vector<8x8xf32> -> vector<8x8xf32>
    %cst_57 = arith.constant 0.353553385 : f32
    %94 = vector.broadcast %cst_57 : f32 to vector<8x8xf32>
    %95 = arith.mulf %93, %94 : vector<8x8xf32>
    %cst_58 = arith.constant dense<0xFF800000> : vector<8xf32>
    %96 = vector.multi_reduction <maximumf>, %95, %cst_58 [1] : vector<8x8xf32> to vector<8xf32>
    %97 = vector.shape_cast %96 : vector<8xf32> to vector<8x1xf32>
    %98 = vector.broadcast %97 : vector<8x1xf32> to vector<8x8xf32>
    %99 = arith.subf %95, %98 : vector<8x8xf32>
    %100 = math.exp %99 : vector<8x8xf32>
    %cst_59 = arith.constant dense<0.000000e+00> : vector<8xf32>
    %101 = vector.multi_reduction <add>, %100, %cst_59 [1] : vector<8x8xf32> to vector<8xf32>
    %102 = vector.shape_cast %101 : vector<8xf32> to vector<8x1xf32>
    %103 = tpu.reciprocal %102 {approx = true} : vector<8x1xf32> -> vector<8x1xf32>
    %104 = vector.broadcast %103 : vector<8x1xf32> to vector<8x8xf32>
    %105 = arith.mulf %100, %104 : vector<8x8xf32>
    %c0_60 = arith.constant 0 : index
    %c0_61 = arith.constant 0 : index
    %c0_62 = arith.constant 0 : index
    %106 = vector.load %arg14[%c0_60, %c0_61, %c0_62] : memref<1x8x8xf32, #tpu.memory_space<vmem>>, vector<1x8x8xf32>
    %107 = vector.shape_cast %106 : vector<1x8x8xf32> to vector<8x8xf32>
    %108 = arith.addf %107, %105 : vector<8x8xf32>
    %c0_63 = arith.constant 0 : index
    %c0_64 = arith.constant 0 : index
    %c0_65 = arith.constant 0 : index
    %109 = vector.load %arg14[%c0_63, %c0_64, %c0_65] : memref<1x8x8xf32, #tpu.memory_space<vmem>>, vector<1x8x8xf32>
    %110 = vector.shape_cast %109 : vector<1x8x8xf32> to vector<8x8xf32>
    %111 = vector.shape_cast %108 : vector<8x8xf32> to vector<1x8x8xf32>
    tpu.vector_store %arg14[%c0_63, %c0_64, %c0_65], %111 {strides = array<i32>} : memref<1x8x8xf32, #tpu.memory_space<vmem>>, vector<1x8x8xf32>,
    %cst_66 = arith.constant dense<0.000000e+00> : vector<8x8xf32>
    %112 = tpu.matmul %105, %92, %cst_66 {dimension_numbers = #tpu.dot_dimension_numbers<[1], [0], [0], [1], [0, 0, 1, 1], [], []>} : vector<8x8xf32>, vector<8x8xf32>, vector<8x8xf32> -> vector<8x8xf32>
    %c0_67 = arith.constant 0 : index
    %c24 = arith.constant 24 : index
    %113 = vector.load %arg15[%c0_67, %c24] : memref<8x32xf32, #tpu.memory_space<vmem>>, vector<8x8xf32>
    tpu.vector_store %arg15[%c0_67, %c24], %112 {strides = array<i32>} : memref<8x32xf32, #tpu.memory_space<vmem>>, vector<8x8xf32>,
    %c0_68 = arith.constant 0 : index
    %c0_69 = arith.constant 0 : index
    %114 = vector.load %arg15[%c0_68, %c0_69] : memref<8x32xf32, #tpu.memory_space<vmem>>, vector<8x32xf32>
    %c0_70 = arith.constant 0 : index
    %c0_71 = arith.constant 0 : index
    %115 = vector.load %arg11[%c0_70, %c0_71] : memref<32x32xf32, #tpu.memory_space<vmem>>, vector<32x32xf32>
    %cst_72 = arith.constant dense<0.000000e+00> : vector<8x32xf32>
    %116 = tpu.matmul %114, %115, %cst_72 {dimension_numbers = #tpu.dot_dimension_numbers<[1], [1], [0], [0], [0, 0, 1, 0], [], []>} : vector<8x32xf32>, vector<32x32xf32>, vector<8x32xf32> -> vector<8x32xf32>
    %c0_73 = arith.constant 0 : index
    %c0_74 = arith.constant 0 : index
    %117 = vector.load %arg12[%c0_73, %c0_74] : memref<1x32xf32, #tpu.memory_space<vmem>>, vector<1x32xf32>
    %118 = vector.broadcast %117 : vector<1x32xf32> to vector<8x32xf32>
    %119 = arith.addf %116, %118 : vector<8x32xf32>
    %c0_75 = arith.constant 0 : index
    %c0_76 = arith.constant 0 : index
    %c0_77 = arith.constant 0 : index
    %120 = vector.load %arg13[%c0_75, %c0_76, %c0_77] : memref<1x8x32xf32, #tpu.memory_space<vmem>>, vector<1x8x32xf32>
    %121 = vector.shape_cast %120 : vector<1x8x32xf32> to vector<8x32xf32>
    %122 = vector.shape_cast %119 : vector<8x32xf32> to vector<1x8x32xf32>
    tpu.vector_store %arg13[%c0_75, %c0_76, %c0_77], %122 {strides = array<i32>} : memref<1x8x32xf32, #tpu.memory_space<vmem>>, vector<1x8x32xf32>,
    %c0_78 = arith.constant 0 : index
    %c0_79 = arith.constant 0 : index
    %c0_80 = arith.constant 0 : index
    %123 = vector.load %arg14[%c0_78, %c0_79, %c0_80] : memref<1x8x8xf32, #tpu.memory_space<vmem>>, vector<1x8x8xf32>
    %124 = vector.shape_cast %123 : vector<1x8x8xf32> to vector<8x8xf32>
    %cst_81 = arith.constant 2.500000e-01 : f32
    %125 = vector.broadcast %cst_81 : f32 to vector<8x8xf32>
    %126 = arith.mulf %124, %125 : vector<8x8xf32>
    %c0_82 = arith.constant 0 : index
    %c0_83 = arith.constant 0 : index
    %c0_84 = arith.constant 0 : index
    %127 = vector.load %arg14[%c0_82, %c0_83, %c0_84] : memref<1x8x8xf32, #tpu.memory_space<vmem>>, vector<1x8x8xf32>
    %128 = vector.shape_cast %127 : vector<1x8x8xf32> to vector<8x8xf32>
    %129 = vector.shape_cast %126 : vector<8x8xf32> to vector<1x8x8xf32>
    tpu.vector_store %arg14[%c0_82, %c0_83, %c0_84], %129 {strides = array<i32>} : memref<1x8x8xf32, #tpu.memory_space<vmem>>, vector<1x8x8xf32>,
    return
  }
  func.func @transform_0(%arg0: i32, %arg1: i32) -> (i32, i32, i32) {
    %c0_i32 = arith.constant 0 : i32
    %c0_i32_0 = arith.constant 0 : i32
    return %arg0, %arg1, %c0_i32 : i32, i32, i32
  }
  func.func @transform_1(%arg0: i32, %arg1: i32) -> (i32, i32, i32) {
    %c0_i32 = arith.constant 0 : i32
    %c0_i32_0 = arith.constant 0 : i32
    %c0_i32_1 = arith.constant 0 : i32
    return %arg0, %c0_i32, %c0_i32_0 : i32, i32, i32
  }
  func.func @transform_2(%arg0: i32, %arg1: i32) -> (i32, i32, i32) {
    %c0_i32 = arith.constant 0 : i32
    %c0_i32_0 = arith.constant 0 : i32
    %c0_i32_1 = arith.constant 0 : i32
    return %arg0, %c0_i32, %c0_i32_0 : i32, i32, i32
  }
  func.func @transform_3(%arg0: i32, %arg1: i32) -> (i32, i32) {
    %c0_i32 = arith.constant 0 : i32
    %c0_i32_0 = arith.constant 0 : i32
    %c0_i32_1 = arith.constant 0 : i32
    return %c0_i32, %c0_i32_0 : i32, i32
  }
  func.func @transform_4(%arg0: i32, %arg1: i32) -> (i32, i32) {
    %c0_i32 = arith.constant 0 : i32
    %c0_i32_0 = arith.constant 0 : i32
    %c0_i32_1 = arith.constant 0 : i32
    return %c0_i32, %c0_i32_0 : i32, i32
  }
  func.func @transform_5(%arg0: i32, %arg1: i32) -> (i32, i32) {
    %c0_i32 = arith.constant 0 : i32
    %c0_i32_0 = arith.constant 0 : i32
    %c0_i32_1 = arith.constant 0 : i32
    return %c0_i32, %c0_i32_0 : i32, i32
  }
  func.func @transform_6(%arg0: i32, %arg1: i32) -> (i32, i32) {
    %c0_i32 = arith.constant 0 : i32
    %c0_i32_0 = arith.constant 0 : i32
    %c0_i32_1 = arith.constant 0 : i32
    return %c0_i32, %c0_i32_0 : i32, i32
  }
  func.func @transform_7(%arg0: i32, %arg1: i32) -> (i32, i32) {
    %c0_i32 = arith.constant 0 : i32
    %c0_i32_0 = arith.constant 0 : i32
    %c0_i32_1 = arith.constant 0 : i32
    return %c0_i32, %c0_i32_0 : i32, i32
  }
  func.func @transform_8(%arg0: i32, %arg1: i32) -> (i32, i32) {
    %c0_i32 = arith.constant 0 : i32
    %c0_i32_0 = arith.constant 0 : i32
    %c0_i32_1 = arith.constant 0 : i32
    return %c0_i32, %c0_i32_0 : i32, i32
  }
  func.func @transform_9(%arg0: i32, %arg1: i32) -> (i32, i32) {
    %c0_i32 = arith.constant 0 : i32
    %c0_i32_0 = arith.constant 0 : i32
    %c0_i32_1 = arith.constant 0 : i32
    return %c0_i32, %c0_i32_0 : i32, i32
  }
  func.func @transform_10(%arg0: i32, %arg1: i32) -> (i32, i32) {
    %c0_i32 = arith.constant 0 : i32
    %c0_i32_0 = arith.constant 0 : i32
    %c0_i32_1 = arith.constant 0 : i32
    return %c0_i32, %c0_i32_0 : i32, i32
  }
  func.func @transform_11(%arg0: i32, %arg1: i32) -> (i32, i32, i32) {
    %c0_i32 = arith.constant 0 : i32
    %c0_i32_0 = arith.constant 0 : i32
    return %arg0, %arg1, %c0_i32 : i32, i32, i32
  }
  func.func @transform_12(%arg0: i32, %arg1: i32) -> (i32, i32, i32) {
    %c0_i32 = arith.constant 0 : i32
    %c0_i32_0 = arith.constant 0 : i32
    return %arg0, %arg1, %c0_i32 : i32, i32, i32
  }
}

</mosaic_0001>

<bundles_post_ra>
// kernel: tpu_custom_call.1
= control target key start
LH: loop header
LB: loop body
LE: loop exit
PB: predicated region body
PF: predicated region fallthrough
CT: control target
= control target key end

     0   :  { %s3059_s0 = inlined_call_operand.hbm [shape: f32[2,8,32], index: 0, kind: input, shape index: {}]   ;;  %s3060_s1 = inlined_call_operand.hbm [shape: f32[2,8,32], index: 1, kind: input, shape index: {}]   ;;  %s3061_s2 = inlined_call_operand.hbm [shape: f32[2,8,32], index: 2, kind: input, shape index: {}]   ;;  %s3062_s3 = inlined_call_operand.hbm [shape: f32[32,32], index: 3, kind: input, shape index: {}]   ;;  %s3063_s4 = inlined_call_operand.vmem [shape: f32[1,32], index: 4, kind: input, shape index: {}]   ;;  %s3064_s5 = inlined_call_operand.hbm [shape: f32[32,32], index: 5, kind: input, shape index: {}]   ;;  %s3065_s6 = inlined_call_operand.vmem [shape: f32[1,32], index: 6, kind: input, shape index: {}]   ;;  %s3066_s7 = inlined_call_operand.hbm [shape: f32[32,32], index: 7, kind: input, shape index: {}]   ;;  %s3067_s8 = inlined_call_operand.vmem [shape: f32[1,32], index: 8, kind: input, shape index: {}]   ;;  %s3068_s9 = inlined_call_operand.hbm [shape: f32[32,32], index: 9, kind: input, shape index: {}]   ;;  %s3069_s10 = inlined_call_operand.vmem [shape: f32[1,32], index: 10, kind: input, shape index: {}]   ;;  %s3070_s11 = inlined_call_operand.hbm [shape: f32[2,8,32], index: 11, kind: output, shape index: {0}]   ;;  %s3071_s12 = inlined_call_operand.hbm [shape: f32[2,8,8], index: 12, kind: output, shape index: {1}]  }
   0x1   :  { %3091 = sst [smem:[#allocation31_spill]] %s3060_s1 }
   0x2   :  { %3092 = sst [smem:[#allocation32_spill]] %s3062_s3 }
   0x3   :  { %3093 = sst [smem:[#allocation33_spill]] %s3064_s5 }
   0x4   :  { %3094 = sst [smem:[#allocation34_spill]] %s3066_s7 }
   0x5   :  { %3095 = sst [smem:[#allocation35_spill]] %s3069_s10 }
   0x6   :  { %3096 = sst [smem:[#allocation36_spill]] %s3070_s11 }
   0x7   :  { %3097 = sst [smem:[#allocation37_spill]] %s3071_s12 }
   0x8   :  { %18 = vsyncpa [#allocation4], 0 }
   0x9   :  { %20 = vsyncpa [#allocation4 + $0x1], 0 }
   0xa   :  { %21 = vsyncpa [#allocation7], 0 }
   0xb   :  { %23 = vsyncpa [#allocation7 + $0x1], 0 }
   0xc   :  { %24 = vsyncpa [#allocation10], 0 }
   0xd   :  { %25 = vsyncpa [#allocation13], 0 }
   0xe   :  { %26 = vsyncpa [#allocation5], 0 }
   0xf   :  { %28 = vsyncpa [#allocation5 + $0x1], 0 }
  0x10   :  { %29 = vsyncpa [#allocation17], 0 }
  0x11   :  { %31 = vsyncpa [#allocation17 + $0x1], 0  ;;  %s2625_s21 = smov 0   ;;  %s2627_s22 = smov 0  }
  0x12   :  { %s2629_s23 = smov 0   ;;  %s2631_s24 = smov 0  }
  0x13   :  { %s2633_s25 = smov 0   ;;  %s2635_s26 = smov 0  }
  0x14 LB: > { %3098 = sst [smem:[#allocation24_spill]] %s2519_s21  ;;  %s2656_s27 = sadd.s32 4294967295, %s2539_s26   ;;  %s2539_s26 = sphi %s2635_s26, %s37_s26   ;;  %s2535_s25 = sphi %s2633_s25, %s3139_s25   ;;  %s2531_s24 = sphi %s2631_s24, %s3138_s24   ;;  %s2527_s23 = sphi %s2629_s23, %s3142_s23   ;;  %s2523_s22 = sphi %s2627_s22, %s3141_s22   ;;  %s2519_s21 = sphi %s2625_s21, %s3140_s21  }
  0x15   : > { %3099 = sst [smem:[#allocation25_spill]] %s2535_s25  ;;  %p1901_p0 = scmp.ge.s32.totalorder %s2539_s26, 1 }
  0x16   : > { %3100 = sst [smem:[#allocation26_spill]] %s2539_s26  ;;  %p3084_p1 = scmp.eq.s32.totalorder %s2656_s27, 0 }
  0x17   : > { %p358_p2 = scmp.lt.s32.totalorder %s2539_s26, 3  ;;  %s2541_s29 = smov [#allocation9]  }
  0x18   : > { %s370_s30 = sshll.u32 %s2541_s29, 4  ;;  %s2542_s14 = smov [#allocation12]   ;;  %s371_s30 = int_to_ptr.vmem [resolvable:$true] %s370_s30 }
  0x19   : > { %p2661_p3 = pnand %p1901_p0, %p358_p2  ;;  %s402_s15 = sshll.u32 %s2542_s14, 4  ;;  %s403_s15 = int_to_ptr.vmem [resolvable:$true] %s402_s15 }
  0x1a   : > { %s2240_s16 = scalar_lea.vmem %s371_s30, 512  ;;  %p2248_p11 = scmp.lt.s32.totalorder %s371_s30, %s371_s30 }
  0x1b   : > { %p2111_p4 = pneg %p2661_p3  ;;  %p2241_p8 = scmp.ne.s32.totalorder %s371_s30, %s2240_s16 }
  0x1c   : > { %p2249_p12 = scmp.lt.s32.totalorder %s2240_s16, %s2240_s16 }
  0x1d   : > { %p2670_p6 = pnand %p2111_p4, %p3084_p1 }
  0x1e   : > { %p2250_p13 = por %p2249_p12, %p2248_p11 }
  0x1f   : > { %p3085_p7 = pneg %p2670_p6 }
  0x21   : > { %p2243_p9 = pnand %p2241_p8, %p3085_p7 }
  0x23   : > { %p2244_p10 = pneg %p2243_p9 }
  0x25   : > { %p2251_p0 = pnand %p2250_p13, %p2244_p10 }
  0x27   : > { %2254 = shalt.err (!%p2251_p0)
}
  0x28   : > { %s3072_s17 = smov 128   ;;  %s3074_s18 = smov 8  }
  0x29   : > { %s3103_s3 = sld [smem:[#allocation32_spill]]  ;;  %s2266_s29 = scalar_lea.vmem %s403_s15, 512 }
  0x2a   : > { %p2267_p2 = scmp.ne.s32.totalorder %s403_s15, %s2266_s29  ;;  %p2274_p9 = scmp.lt.s32.totalorder %s403_s15, %s403_s15 }
  0x2b   : > { %p2275_p10 = scmp.lt.s32.totalorder %s2266_s29, %s2266_s29 }
  0x2c   : > { %p2269_p4 = pnand %p2267_p2, %p3085_p7 }
  0x2d   : > { %p2276_p11 = por %p2275_p10, %p2274_p9 }
  0x2e   : > { %p2270_p8 = pneg %p2269_p4 }
  0x2f   : > { %2114 = dma.hbm_to_vmem [thread:$0]  (!%p2670_p6), %s3103_s3, 512, %s371_s30, [#allocation10], %s3072_s17, %s3072_s17, %s3074_s18  }
  0x30   : > { %p2277_p12 = pnand %p2276_p11, %p2270_p8 }
  0x32   : > { %2280 = shalt.err (!%p2277_p12)
}
  0x33   : > { %s3104_s7 = sld [smem:[#allocation34_spill]]  ;;  %s1900_s30 = sadd.s32 4294967294, %s2539_s26  }
  0x34   : > { %s49_s19 = sadd.s32 1, %s2535_s25  ;;  %s58_s20 = sadd.s32 1, %s2527_s23 }
  0x35   : > { %p51_p13 = scmp.ge.s32.totalorder %s49_s19, 2  ;;  %p65_p0 = scmp.ne.s32.totalorder %s2527_s23, %s2523_s22 }
  0x36   : > { %p66_p2 = scmp.eq.s32.totalorder %s2539_s26, 0  ;;  %p71_p8 = scmp.ne.s32.totalorder %s2523_s22, %s2519_s21 }
  0x37   : > { %s3144_s19 = smov (%p51_p13, %s49_s19), 0  ;;  %p317_p9 = scmp.eq.s32.totalorder %s2656_s27, 1 }
  0x38   : > { %3105 = sst [smem:[#allocation27_spill]] %s3144_s19  ;;  %p2706_p4 = por %p66_p2, %p65_p0 }
  0x39   : > { %2120 = dma.hbm_to_vmem [thread:$0]  (!%p2670_p6), %s3104_s7, 512, %s403_s15, [#allocation13], %s3072_s17, %s3072_s17, %s3074_s18  }
  0x3a   : > { %s53_s15 = ssub.s32 %s2535_s25, %s3144_s19  ;;  %p2717_p11 = por %p3084_p1, %p71_p8 }
  0x3b   : > { %p56_p10 = scmp.eq.s32.totalorder %s53_s15, 0  ;;  %p2721_p12 = por %p317_p9, %p65_p0 }
  0x3c   : > { %p323_p13 = scmp.eq.s32.totalorder %s1900_s30, 1  ;;  %p2145_p5 = scmp.lt.s32.totalorder %s2539_s26, 2 }
  0x3d   : > { %s3108_s16 = scalar_select %p2721_p12, 1, 0 }
  0x3e   : > { %s2726_s17 = scalar_select %p56_p10, %s2527_s23, %s58_s20  }
  0x3f   : > { %3109 = sst [smem:[#allocation28_spill]] %s3108_s16  ;;  %p2728_p2 = por %p323_p13, %p71_p8 }
  0x40   : > { %3110 = sst [smem:[#allocation29_spill]] %s2726_s17  ;;  %s3081_s3 = sand.u32 1, %s2527_s23  }
  0x41   : > { %s3111_s18 = scalar_select %p2728_p2, 1, 0 }
  0x42   : > { %s2735_s7 = sshll.u32 %s2535_s25, 7  ;;  %s2739_s15 = sshll.u32 %s3081_s3, 3 }
  0x43   : > { %3112 = sst [smem:[#allocation30_spill]] %s3111_s18  ;;  %p2743_p0 = pnand %p2145_p5, %p2706_p4 }
  0x44   : > { %s454_s30 = sand.u32 1, %s2539_s26   ;;  %s3114_s1 = sld [smem:[#allocation31_spill]] }
  0x45   : > { %s458_s21 = scalar_lea.vmem [#allocation6], %s2739_s15  ;;  %s2753_s11 = scalar_lea.sflag [#allocation7], %s454_s30 }
  0x46   : > { %s465_s25 = sshll.u32 %s458_s21, 4  ;;  %p3086_p8 = pneg %p2743_p0  ;;  %s466_s25 = int_to_ptr.vmem [resolvable:$true] %s465_s25 }
  0x47   : > { %s2294_s29 = scalar_lea.vmem %s466_s25, 128  ;;  %s2545_s3 = smov [#allocation6]  }
  0x48   : > { %p2295_p9 = scmp.ne.s32.totalorder %s466_s25, %s2294_s29  ;;  %s2299_s10 = sshll.u32 %s2545_s3, 4  ;;  %s2300_s10 = int_to_ptr.vmem [resolvable:$false] %s2299_s10 }
  0x49   : > { %s2301_s26 = scalar_lea.vmem %s2300_s10, 256  ;;  %p2302_p10 = scmp.lt.s32.totalorder %s466_s25, %s2300_s10 }
  0x4a   : > { %s463_s18 = scalar_lea.hbm %s3114_s1, %s2735_s7  ;;  %p2297_p5 = pnand %p2295_p9, %p3086_p8 }
  0x4b   : > { %p2303_p13 = scmp.lt.s32.totalorder %s2301_s26, %s2294_s29 }
  0x4c   : > { %p2298_p4 = pneg %p2297_p5 }
  0x4d   : > { %p2304_p1 = por %p2303_p13, %p2302_p10 }
  0x4f   : > { %p2305_p7 = pnand %p2304_p1, %p2298_p4 }
  0x51   : > { %2308 = shalt.err (!%p2305_p7)
}
  0x52   : > { %2130 = dma.hbm_to_vmem [thread:$0]  (!%p2743_p0), %s463_s18, 128, %s466_s25, %s2753_s11  }
  0x53   : > { %s2546_s21 = smov [#allocation11]   ;;  %s2547_s30 = smov [#allocation14]  }
  0x54   : > { %s386_s17 = sshll.u32 %s2546_s21, 4  ;;  %s418_s20 = sshll.u32 %s2547_s30, 4  ;;  %s387_s17 = int_to_ptr.vmem [resolvable:$true] %s386_s17  ;;  %s419_s20 = int_to_ptr.vmem [resolvable:$true] %s418_s20 }
  0x55   : > { %s2320_s1 = scalar_lea.vmem %s387_s17, 512  ;;  %p3115_p5 = pneg %p2670_p6 }
  0x56   : > { %p2321_p9 = scmp.ne.s32.totalorder %s387_s17, %s2320_s1  ;;  %p2328_p12 = scmp.lt.s32.totalorder %s387_s17, %s387_s17 }
  0x57   : > { %p2329_p10 = scmp.lt.s32.totalorder %s2320_s1, %s2320_s1 }
  0x58   : > { %p2323_p8 = pnand %p2321_p9, %p3115_p5 }
  0x59   : > { %p2330_p1 = por %p2329_p10, %p2328_p12 }
  0x5a   : > { %p2324_p2 = pneg %p2323_p8 }
  0x5c   : > { %p2331_p7 = pnand %p2330_p1, %p2324_p2 }
  0x5e   : > { %2334 = shalt.err (!%p2331_p7)
}
  0x5f   : > { %s3116_s3 = smov 8   ;;  %s3117_s10 = smov 128  }
  0x60   : > { %s3118_s5 = sld [smem:[#allocation33_spill]]  ;;  %s2346_s18 = scalar_lea.vmem %s419_s20, 512 }
  0x61   : > { %p2347_p4 = scmp.ne.s32.totalorder %s419_s20, %s2346_s18  ;;  %p3119_p8 = pmov %p3115_p5 }
  0x62   : > { %p2354_p12 = scmp.lt.s32.totalorder %s419_s20, %s419_s20  ;;  %p2355_p2 = scmp.lt.s32.totalorder %s2346_s18, %s2346_s18 }
  0x63   : > { %p2349_p13 = pnand %p2347_p4, %p3119_p8 }
  0x64   : > { %p2356_p5 = por %p2355_p2, %p2354_p12 }
  0x65   : > { %p2350_p9 = pneg %p2349_p13 }
  0x66   : > { %2117 = dma.hbm_to_vmem [thread:$0]  (!%p2670_p6), %s3118_s5, 512, %s387_s17, [#allocation10], %s3117_s10, %s3117_s10, %s3116_s3  }
  0x67   : > { %p2357_p10 = pnand %p2356_p5, %p2350_p9 }
  0x69   : > { %2360 = shalt.err (!%p2357_p10)
}
  0x6a   : > { %2123 = dma.hbm_to_vmem [thread:$0]  (!%p2670_p6), %s3068_s9, 512, %s419_s20, [#allocation13], %s3117_s10, %s3117_s10, %s3116_s3  }
  0x6b   : > { %s445_s30 = scalar_lea.hbm %s3059_s0, %s2735_s7  ;;  %s439_s25 = scalar_lea.vmem [#allocation3], %s2739_s15 }
  0x6c   : > { %s447_s26 = sshll.u32 %s439_s25, 4  ;;  %s481_s5 = scalar_lea.hbm %s3061_s2, %s2735_s7  ;;  %s448_s26 = int_to_ptr.vmem [resolvable:$true] %s447_s26 }
  0x6d   : > { %s3120_s12 = sand.u32 1, %s2527_s23   ;;  %s2374_s1 = scalar_lea.vmem %s448_s26, 128 }
  0x6e   : > { %s436_s16 = scalar_lea.sflag [#allocation4], %s3120_s12  ;;  %p2375_p1 = scmp.ne.s32.totalorder %s448_s26, %s2374_s1 }
  0x6f   : > { %p3121_p7 = pneg %p2743_p0  ;;  %s2548_s20 = smov [#allocation3]  }
  0x70   : > { %s2379_s3 = sshll.u32 %s2548_s20, 4  ;;  %s2380_s3 = int_to_ptr.vmem [resolvable:$false] %s2379_s3 }
  0x71   : > { %p2377_p4 = pnand %p2375_p1, %p3121_p7  ;;  %s2381_s10 = scalar_lea.vmem %s2380_s3, 256 }
  0x72   : > { %p2382_p6 = scmp.lt.s32.totalorder %s448_s26, %s2380_s3  ;;  %p2383_p13 = scmp.lt.s32.totalorder %s2381_s10, %s2374_s1 }
  0x73   : > { %p2378_p8 = pneg %p2377_p4 }
  0x74   : > { %p2384_p9 = por %p2383_p13, %p2382_p6 }
  0x76   : > { %p2385_p12 = pnand %p2384_p9, %p2378_p8 }
  0x78   : > { %2388 = shalt.err (!%p2385_p12)
}
  0x79   : > { %2127 = dma.hbm_to_vmem [thread:$0]  (!%p2743_p0), %s445_s30, 128, %s448_s26, %s436_s16  }
  0x7a   : > { %s476_s12 = scalar_lea.vmem [#allocation8], %s2739_s15  ;;  %p3122_p5 = pmov %p3121_p7 }
  0x7b   : > { %s483_s29 = sshll.u32 %s476_s12, 4  ;;  %s2549_s17 = smov [#allocation8]   ;;  %s484_s29 = int_to_ptr.vmem [resolvable:$true] %s483_s29 }
  0x7c   : > { %s2402_s21 = scalar_lea.vmem %s484_s29, 128  ;;  %s2407_s25 = sshll.u32 %s2549_s17, 4  ;;  %s2408_s25 = int_to_ptr.vmem [resolvable:$false] %s2407_s25 }
  0x7d   : > { %p2403_p2 = scmp.ne.s32.totalorder %s484_s29, %s2402_s21  ;;  %s2409_s13 = scalar_lea.vmem %s2408_s25, 256 }
  0x7e   : > { %p2410_p7 = scmp.lt.s32.totalorder %s484_s29, %s2408_s25  ;;  %p2411_p4 = scmp.lt.s32.totalorder %s2409_s13, %s2402_s21 }
  0x7f   : > { %p2405_p10 = pnand %p2403_p2, %p3122_p5 }
  0x80   : > { %p2412_p8 = por %p2411_p4, %p2410_p7 }
  0x81   : > { %p2406_p1 = pneg %p2405_p10 }
  0x83   : > { %p2413_p6 = pnand %p2412_p8, %p2406_p1 }
  0x85   : > { %2416 = shalt.err (!%p2413_p6)
}
  0x86   : > { %2133 = dma.hbm_to_vmem [thread:$0]  (!%p2743_p0), %s481_s5, 128, %s484_s29, %s2753_s11  }
  0x87   : > { %492 = sbr.rel (%p2661_p3) target bundleno = 2931 (0xb73), region = 64  ;;  %s2816_s30 = sand.u32 (!%p2661_p3), 1, %s2523_s22  }
  0x88   : > { %s2819_s26 = sshll.u32 (!%p2661_p3), %s2816_s30, 3  ;;  %s495_s19 = scalar_lea.sflag (!%p2661_p3), [#allocation4], %s2816_s30 }
  0x89   : > { %s498_s18 = scalar_lea.vmem (!%p2661_p3), [#allocation3], %s2819_s26 }
  0x8c   : > { %2494 = dma.done.wait (%p2717_p11), %s495_s19, 128  }
  0x8d   : > { %2496 = vsyncadd (%p2717_p11), %s495_s19, 4294967168  ;;  %s503_s5 = sand.u32 1, %s2656_s27   ;;  %s507_s11 = scalar_lea.vmem [#allocation6], %s2819_s26 }
  0x8e   : > { %s504_s7 = scalar_lea.sflag [#allocation7], %s503_s5 }
  0x8f   : > { %2498 = dma.done.wait (%p2717_p11), %s504_s7, 256  }
  0x90   : > { %2500 = vsyncadd (%p2717_p11), %s504_s7, 4294967040  ;;  %s516_s28 = scalar_lea.vmem [#allocation8], %s2819_s26  ;;  %p3123_p3 = scmp.eq.s32.totalorder %s2656_s27, 0 }
  0x92   : > { %2502 = dma.done.wait (%p3123_p3), [#allocation10], 1024   ;;  %p3124_p0 = pmov %p3123_p3 }
  0x94   : > { %2504 = vsyncadd (%p3124_p0), [#allocation10], 4294966272  ;;  %p3125_p13 = pmov %p3124_p0 }
  0x95   : > { %p3126_p9 = pmov %p3124_p0 }
  0x96   : > { %2506 = dma.done.wait (%p3125_p13), [#allocation13], 1024  }
  0x97   : > { %2508 = vsyncadd (%p3126_p9), [#allocation13], 4294966272  ;;  %v2550_v0 = vmov 0.0   ;;  %vm2551_vm0 = vmmov 0   ;;  %vm602_vm1 = vcmask 261120   ;;  %v691_v1 = vld [vmem:[#allocation11 + $0x18] sm:$0xff] }
  0x98   : > { %2012 = vmatprep.subr.mxu1 %v2550_v0  ;;  %2001 = vmatprep.subr.mxu0 %v2550_v0  ;;  %v594_v2 = vld [vmem:[#allocation9 + $0x18] sm:$0xff]  ;;  %v690_v3 = vld [vmem:[#allocation11 + $0x10] sm:$0xff]  ;;  %v689_v5 = vld [vmem:[#allocation11 + $0x8] sm:$0xff]  ;;  %vm880_vm2 = vcmask 64512   ;;  %s2552_s3 = smov 120   ;;  %s2918_s29 = scalar_lea.vmem [#allocation16], %s2819_s26 }
  0x99   : > { %2020 = vmatprep.mubr.msk.f32.mxu1 %vm2551_vm0, %v2550_v0  ;;  %2009 = vmatprep.mubr.msk.f32.mxu0 %vm2551_vm0, %v2550_v0  ;;  %v593_v4 = vld [vmem:[#allocation9 + $0x10] sm:$0xff]  ;;  %v592_v6 = vld [vmem:[#allocation9 + $0x8] sm:$0xff]  ;;  %v688_v7 = vld [vmem:[#allocation11] sm:$0xff]  ;;  %s2553_s21 = smov 112   ;;  %s2554_s17 = smov 104   ;;  %vm1218_vm3 = vcmask 130112  }
  0x9a   : > { %2013 = vmatpush3.xpose.msk.msra.mxu1 %vm602_vm1, %v691_v1  ;;  %2002 = vmatpush3.xpose.msk.msra.mxu0 %vm602_vm1, %v594_v2  ;;  %v591_v8 = vld [vmem:[#allocation9] sm:$0xff]  ;;  %v588_v10 = vld [vmem:[%s498_s18] sm:$0xff]  ;;  %v1929_v11 = vld [vmem:[%s3065_s6] ss:$0 sm:$0xff]  ;;  %s2555_s25 = smov 8   ;;  %s2556_s13 = smov 16  }
  0x9b   : > { %2014 = vmatprep.subr.mxu1 %v2550_v0  ;;  %2003 = vmatprep.subr.mxu0 %v2550_v0  ;;  %v589_v9 = vld [vmem:[%s507_s11] sm:$0xff]  ;;  %v787_v19 = vld [vmem:[#allocation12 + $0x18] sm:$0xff]  ;;  %v786_v20 = vld [vmem:[#allocation12 + $0x10] sm:$0xff]  ;;  %vm1393_vm4 = vcmask 195712   ;;  %s3127_s16 = sld [smem:[#allocation28_spill]]  ;;  %s2557_s15 = smov 24  }
  0x9c   : > { %v1923_v12 = vld [vmem:[%s3063_s4] ss:$0 sm:$0xff]  ;;  %v784_v22 = vld [vmem:[#allocation12] sm:$0xff]  ;;  %v590_v23 = vld [vmem:[%s516_s28] sm:$0xff]  ;;  %vm1568_vm5 = vcmask 261312   ;;  %s1961_s19 = sshll.u32 %s2531_s24, 7 }
  0x9d   : > { %v785_v21 = vld [vmem:[#allocation12 + $0x8] sm:$0xff]  ;;  %s3128_s7 = sld [smem:[#allocation37_spill]]  ;;  %s1705_s28 = sshll.u32 %s2918_s29, 4  ;;  %s1706_s28 = int_to_ptr.vmem [resolvable:$true] %s1705_s28 }
  0x9e   : > { %2015 = vmatpush3.xpose.msk.msra.mxu1 %vm602_vm1, %v690_v3  ;;  %2004 = vmatpush3.xpose.msk.msra.mxu0 %vm602_vm1, %v593_v4  ;;  %v1935_v33 = vld [vmem:[%s3067_s8] ss:$0 sm:$0xff]  ;;  %s1677_s27 = scalar_lea.sflag [#allocation17], %s2816_s30  ;;  %s2417_s14 = scalar_lea.vmem %s1706_s28, 128 }
  0x9f   : > { %2016 = vmatprep.subr.mxu1 %v2550_v0  ;;  %2005 = vmatprep.subr.mxu0 %v2550_v0  ;;  %p2418_p11 = scmp.ne.s32.totalorder %s1706_s28, %s2417_s14  ;;  %s2558_s1 = smov [#allocation16]  }
  0xa0   : > { %s2421_s20 = sshll.u32 %s2558_s1, 4  ;;  %s2422_s20 = int_to_ptr.vmem [resolvable:$false] %s2421_s20 }
  0xa1   : > { %p3129_p12 = scmp.ne.s32.totalorder %s3127_s16, 0  ;;  %p2424_p10 = scmp.lt.s32.totalorder %s1706_s28, %s2422_s20 }
  0xa2   : > { %2017 = vmatpush3.xpose.msk.msra.mxu1 %vm602_vm1, %v689_v5  ;;  %2006 = vmatpush3.xpose.msk.msra.mxu0 %vm602_vm1, %v592_v6 }
  0xa3   : > { %2018 = vmatprep.subr.mxu1 %v2550_v0  ;;  %2007 = vmatprep.subr.mxu0 %v2550_v0  ;;  %s1703_s11 = scalar_lea.hbm %s3128_s7, %s1961_s19  ;;  %p2419_p2 = pnand %p2418_p11, %p3129_p12 }
  0xa5   : > { %p2420_p5 = pneg %p2419_p2 }
  0xa6   : > { %2019 = vmatpush3.xpose.msk.msra.mxu1 %vm602_vm1, %v688_v7  ;;  %2008 = vmatpush3.xpose.msk.msra.mxu0 %vm602_vm1, %v591_v8 }
  0xa7   : > { %2034 = vmatprep.subr.mxu1 %v2550_v0  ;;  %2023 = vmatprep.subr.mxu0 %v2550_v0 }
  0xa9   : > { %2021 = vmatmul.mubr.msk.f32.vlgmr.msra.gmra.mxu1 %vm602_vm1, %v589_v9  ;;  %2010 = vmatmul.mubr.msk.f32.vlgmr.msra.gmra.mxu0 %vm602_vm1, %v588_v10 }
  0xaa   : > { %2036 = vmatprep.mubr.msk.f32.mxu1 %vm2551_vm0, %v2550_v0  ;;  %2031 = vmatprep.mubr.msk.f32.mxu0 %vm2551_vm0, %v2550_v0 }
  0xab   : > { %2024 = vmatpush3.xpose.msk.msra.mxu0 %vm602_vm1, %v787_v19 }
  0xac   : > { %2025 = vmatprep.subr.mxu0 %v2550_v0 }
  0xaf   : > { %2026 = vmatpush3.xpose.msk.msra.mxu0 %vm602_vm1, %v786_v20 }
  0xb0   : > { %2027 = vmatprep.subr.mxu0 %v2550_v0 }
  0xb3   : > { %2028 = vmatpush3.xpose.msk.msra.mxu0 %vm602_vm1, %v785_v21 }
  0xb4   : > { %2029 = vmatprep.subr.mxu0 %v2550_v0 }
  0xb7   : > { %2030 = vmatpush3.xpose.msk.msra.mxu0 %vm602_vm1, %v784_v22 }
  0xb8   : > { %2074 = vmatprep.subr.mxu0 %v2550_v0 }
  0xba   : > { %2032 = vmatmul.mubr.msk.f32.vlgmr.msra.gmra.mxu0 %vm602_vm1, %v590_v23 }
  0xbb   : > { %2082 = vmatprep.mubr.msk.f32.mxu0 %vm2551_vm0, %v2550_v0 }
 0x169   : > { %v780_v13 = vpop.f32.mrf.mxu1  ;;  %v684_v14 = vpop.f32.mrf.mxu0 }
 0x16a   : > { %v2880_v15 = vadd.f32 %v1929_v11, %v780_v13  ;;  %v2882_v16 = vadd.f32 %v1923_v12, %v684_v14 }
 0x16b   : > { %v2022_v17 = vpop.f32.mrf.mxu1  ;;  %v2011_v18 = vpop.f32.mrf.mxu0 }
 0x16c   : > { %1046 = vrot.lane.b32.xlu1 %v2880_v15, %s2552_s3  ;;  %2035 = vmatpush3.xpose.msk.msra.mxu1 %vm880_vm2, %v2880_v15 }
 0x16d   : > { %2039 = vmatprep.subr.mxu1 %v2550_v0 }
 0x16f   : > { %2037 = vmatmul.mubr.msk.f32.vlgmr.msra.gmra.mxu1 %vm880_vm2, %v2882_v16 }
 0x170   : > { %1044 = vrot.lane.b32.xlu1 %v2882_v16, %s2552_s3  ;;  %2041 = vmatprep.mubr.msk.f32.mxu1 %vm2551_vm0, %v2550_v0 }
 0x17a   : > { %v876_v34 = vpop.f32.mrf.mxu0 }
 0x17b   : > { %v2913_v35 = vadd.f32 %v1935_v33, %v876_v34 }
 0x17c   : > { %v2033_v36 = vpop.f32.mrf.mxu0 }
 0x17d   : > { %2040 = vmatpush3.msra.mxu1 %v2913_v35 }
 0x17e   : > { %2044 = vmatprep.subr.mxu1 %v2550_v0 }
 0x1de   : > { %v1047_v39 = vpop.permute.xlu1 %1046 }
 0x1e2   : > { %v1045_v41 = vpop.permute.xlu1 %1044 }
 0x22f   : > { %v953_v24 = vpop.f32.mrf.mxu1 }
 0x230   : > { %v957_v25 = vmul.f32 0.35355338, %v953_v24 }
 0x231   : > { %v2038_v26 = vpop.f32.mrf.mxu1 }
 0x232   : > { %v958_v27 = vsel %vm880_vm2, %v957_v25, -inf }
 0x233   : > { %959 = vmax.xlane.f32.xlu0 %v958_v27 }
 0x2bc   : > { %v960_v28 = vpop.xlane.xlu0 %959 }
 0x2bd   : > { %v961_v29 = vsub.f32 %v957_v25, %v960_v28 }
 0x2bf   : > { %v962_v30 = vmul.f32 1.442695, %v961_v29 }
 0x2c1   : > { %2213 = vpow2.f32 %v962_v30 }
 0x2ce   : > { %v2214_v31 = vpop.eup %2213 }
 0x2cf   : > { %v964_v32 = vsel %vm880_vm2, %v2214_v31, 0.0 }
 0x2d0   : > { %965 = vadd.xlane.f32.xlu0 %v964_v32 }
 0x359   : > { %v966_v37 = vpop.xlane.xlu0 %965 }
 0x35a   : > { %2215 = vrcp.f32 %v966_v37 }
 0x367   : > { %v2216_v38 = vpop.eup %2215 }
 0x368   : > { %v968_v40 = vmul.f32 %v2216_v38, %v2214_v31  ;;  %v1574_v38 = vld [vmem:[#allocation14 + $0x18] sm:$0xff] }
 0x369   : > { %2075 = vmatpush3.xpose.msk.msra.mxu0 %vm602_vm1, %v1574_v38 }
 0x36a   : > { %969 = vst.msk [vmem:[%s2918_s29] sm:$0xff] %vm880_vm2, %v968_v40  ;;  %2042 = vmatmul.mubr.msk.f32.vlgmr.msra.gmra.mxu1 %vm880_vm2, %v968_v40  ;;  %2076 = vmatprep.subr.mxu0 %v2550_v0  ;;  %v1572_v40 = vld [vmem:[#allocation14 + $0x8] sm:$0xff] }
 0x36b   : > { %2045 = vmatpush3.xpose.msk.msra.mxu1 %vm880_vm2, %v1047_v39  ;;  %2046 = vmatprep.mubr.msk.f32.mxu1 %vm2551_vm0, %v2550_v0  ;;  %v1573_v39 = vld [vmem:[#allocation14 + $0x10] sm:$0xff] }
 0x36c   : > { %2049 = vmatprep.subr.mxu1 %v2550_v0 }
 0x36d   : > { %2077 = vmatpush3.xpose.msk.msra.mxu0 %vm602_vm1, %v1573_v39 }
 0x36e   : > { %2047 = vmatmul.mubr.msk.f32.vlgmr.msra.gmra.mxu1 %vm880_vm2, %v1045_v41  ;;  %2078 = vmatprep.subr.mxu0 %v2550_v0  ;;  %v1571_v41 = vld [vmem:[#allocation14] sm:$0xff] }
 0x36f   : > { %2051 = vmatprep.mubr.msk.f32.mxu1 %vm2551_vm0, %v2550_v0 }
 0x371   : > { %v1134_v58 = vld [vmem:[%s2918_s29] sm:$0xff]  ;;  %2079 = vmatpush3.xpose.msk.msra.mxu0 %vm602_vm1, %v1572_v40 }
 0x372   : > { %2080 = vmatprep.subr.mxu0 %v2550_v0 }
 0x375   : > { %2081 = vmatpush3.xpose.msk.msra.mxu0 %vm602_vm1, %v1571_v41 }
 0x42a   : > { %v1039_v42 = vpop.f32.mrf.mxu1 }
 0x42b   : > { %1043 = vst.msk [vmem:[#allocation2] sm:$0xff] %vm880_vm2, %v1039_v42 }
 0x42c   : > { %v2043_v43 = vpop.f32.mrf.mxu1 }
 0x42e   : > { %v1118_v44 = vpop.f32.mrf.mxu1 }
 0x42f   : > { %v1122_v45 = vmul.f32 0.35355338, %v1118_v44 }
 0x430   : > { %v2048_v46 = vpop.f32.mrf.mxu1 }
 0x431   : > { %v1123_v47 = vsel %vm880_vm2, %v1122_v45, -inf }
 0x432   : > { %1124 = vmax.xlane.f32.xlu0 %v1123_v47 }
 0x448   : > { %1138 = vrot.lane.b32.xlu0 %v2913_v35, %s2552_s3  ;;  %s2423_s3 = scalar_lea.vmem %s2422_s20, 256 }
 0x449   : > { %p2425_p1 = scmp.lt.s32.totalorder %s2423_s3, %s2417_s14 }
 0x44b   : > { %p2426_p7 = por %p2425_p1, %p2424_p10 }
 0x44c   : > { %1222 = vrot.lane.b32.xlu0 %v2880_v15, %s2553_s21 }
 0x44d   : > { %p2427_p4 = pnand %p2426_p7, %p2420_p5 }
 0x450   : > { %1220 = vrot.lane.b32.xlu0 %v2882_v16, %s2553_s21 }
 0x4bb   : > { %v1125_v48 = vpop.xlane.xlu0 %1124 }
 0x4bc   : > { %v1126_v49 = vsub.f32 %v1122_v45, %v1125_v48 }
 0x4be   : > { %v1127_v50 = vmul.f32 1.442695, %v1126_v49 }
 0x4bf   : > { %v1139_v51 = vpop.permute.xlu0 %1138 }
 0x4c0   : > { %2217 = vpow2.f32 %v1127_v50  ;;  %2050 = vmatpush3.msra.mxu1 %v1139_v51 }
 0x4c1   : > { %2054 = vmatprep.subr.mxu1 %v2550_v0 }
 0x4c3   : > { %v1223_v56 = vpop.permute.xlu0 %1222 }
 0x4c7   : > { %v1221_v60 = vpop.permute.xlu0 %1220 }
 0x4cd   : > { %v2218_v52 = vpop.eup %2217 }
 0x4ce   : > { %v1129_v53 = vsel %vm880_vm2, %v2218_v52, 0.0 }
 0x4cf   : > { %1130 = vadd.xlane.f32.xlu1 %v1129_v53 }
 0x4e0   : > { %1313 = vrot.lane.b32.xlu1 %v2913_v35, %s2553_s21 }
 0x4e4   : > { %1397 = vrot.lane.b32.xlu1 %v2880_v15, %s2554_s17 }
 0x558   : > { %v1131_v54 = vpop.xlane.xlu1 %1130 }
 0x559   : > { %2219 = vrcp.f32 %v1131_v54 }
 0x55c   : > { %v1314_v61 = vpop.permute.xlu1 %1313 }
 0x560   : > { %v1398_v10 = vpop.permute.xlu1 %1397 }
 0x566   : > { %v2220_v55 = vpop.eup %2219 }
 0x567   : > { %v1133_v57 = vmul.f32 %v2220_v55, %v2218_v52 }
 0x569   : > { %v1135_v59 = vadd.f32 %v1134_v58, %v1133_v57  ;;  %2052 = vmatmul.mubr.msk.f32.vlgmr.msra.gmra.mxu1 %vm880_vm2, %v1133_v57 }
 0x56a   : > { %2055 = vmatpush3.xpose.msk.msra.mxu1 %vm880_vm2, %v1223_v56  ;;  %2056 = vmatprep.mubr.msk.f32.mxu1 %vm2551_vm0, %v2550_v0 }
 0x56b   : > { %1136 = vst.msk [vmem:[%s2918_s29] sm:$0xff] %vm880_vm2, %v1135_v59  ;;  %2059 = vmatprep.subr.mxu1 %v2550_v0 }
 0x56d   : > { %2057 = vmatmul.mubr.msk.f32.vlgmr.msra.gmra.mxu1 %vm880_vm2, %v1221_v60 }
 0x56e   : > { %2060 = vmatpush3.msra.mxu1 %v1314_v61  ;;  %2061 = vmatprep.mubr.msk.f32.mxu1 %vm2551_vm0, %v2550_v0 }
 0x56f   : > { %2064 = vmatprep.subr.mxu1 %v2550_v0 }
 0x572   : > { %v1310_v14 = vld [vmem:[%s2918_s29] sm:$0xff] }
 0x629   : > { %v1210_v62 = vpop.f32.mrf.mxu1 }
 0x62b   : > { %v2053_v63 = vpop.f32.mrf.mxu1 }
 0x62d   : > { %v1294_v1 = vpop.f32.mrf.mxu1 }
 0x62e   : > { %v1298_v2 = vmul.f32 0.35355338, %v1294_v1 }
 0x62f   : > { %v2058_v3 = vpop.f32.mrf.mxu1 }
 0x630   : > { %v1299_v4 = vsel %vm880_vm2, %v1298_v2, -inf }
 0x631   : > { %1300 = vmax.xlane.f32.xlu0 %v1299_v4 }
 0x6ba   : > { %v1301_v5 = vpop.xlane.xlu0 %1300 }
 0x6bb   : > { %v1302_v6 = vsub.f32 %v1298_v2, %v1301_v5 }
 0x6bd   : > { %v1303_v7 = vmul.f32 1.442695, %v1302_v6 }
 0x6bf   : > { %2221 = vpow2.f32 %v1303_v7 }
 0x6cc   : > { %v2222_v8 = vpop.eup %2221 }
 0x6cd   : > { %v1305_v9 = vsel %vm880_vm2, %v2222_v8, 0.0 }
 0x6ce   : > { %1306 = vadd.xlane.f32.xlu1 %v1305_v9 }
 0x6df   : > { %1395 = vrot.lane.b32.xlu1 %v2882_v16, %s2554_s17 }
 0x757   : > { %v1307_v11 = vpop.xlane.xlu1 %1306 }
 0x758   : > { %2223 = vrcp.f32 %v1307_v11 }
 0x75b   : > { %v1396_v17 = vpop.permute.xlu1 %1395 }
 0x765   : > { %v2224_v12 = vpop.eup %2223 }
 0x766   : > { %v1309_v13 = vmul.f32 %v2224_v12, %v2222_v8 }
 0x768   : > { %v1311_v15 = vadd.f32 %v1310_v14, %v1309_v13  ;;  %2062 = vmatmul.mubr.msk.f32.vlgmr.msra.gmra.mxu1 %vm880_vm2, %v1309_v13 }
 0x769   : > { %2065 = vmatpush3.xpose.msk.msra.mxu1 %vm880_vm2, %v1398_v10  ;;  %2066 = vmatprep.mubr.msk.f32.mxu1 %vm2551_vm0, %v2550_v0 }
 0x76a   : > { %1312 = vst.msk [vmem:[%s2918_s29] sm:$0xff] %vm880_vm2, %v1311_v15  ;;  %2069 = vmatprep.subr.mxu1 %v2550_v0 }
 0x76c   : > { %2067 = vmatmul.mubr.msk.f32.vlgmr.msra.gmra.mxu1 %vm880_vm2, %v1396_v17 }
 0x76d   : > { %2071 = vmatprep.mubr.msk.f32.mxu1 %vm2551_vm0, %v2550_v0 }
 0x771   : > { %v1485_v34 = vld [vmem:[%s2918_s29] sm:$0xff] }
 0x828   : > { %v1385_v16 = vpop.f32.mrf.mxu1 }
 0x82a   : > { %v2063_v18 = vpop.f32.mrf.mxu1 }
 0x82c   : > { %v1469_v19 = vpop.f32.mrf.mxu1 }
 0x82d   : > { %v1473_v20 = vmul.f32 0.35355338, %v1469_v19 }
 0x82e   : > { %v2068_v21 = vpop.f32.mrf.mxu1 }
 0x82f   : > { %v1474_v22 = vsel %vm880_vm2, %v1473_v20, -inf }
 0x830   : > { %1475 = vmax.xlane.f32.xlu0 %v1474_v22 }
 0x846   : > { %1488 = vrot.lane.b32.xlu0 %v2913_v35, %s2554_s17 }
 0x84a   : > { %1215 = vrot.lane.b32.xlu0 %v1210_v62, %s2555_s25 }
 0x84e   : > { %1390 = vrot.lane.b32.xlu0 %v1385_v16, %s2556_s13 }
 0x8b9   : > { %v1476_v23 = vpop.xlane.xlu0 %1475 }
 0x8ba   : > { %v1477_v24 = vsub.f32 %v1473_v20, %v1476_v23 }
 0x8bc   : > { %v1478_v25 = vmul.f32 1.442695, %v1477_v24 }
 0x8bd   : > { %v1489_v26 = vpop.permute.xlu0 %1488 }
 0x8be   : > { %2225 = vpow2.f32 %v1478_v25  ;;  %2070 = vmatpush3.msra.mxu1 %v1489_v26 }
 0x8c1   : > { %v1216_v27 = vpop.permute.xlu0 %1215 }
 0x8c2   : > { %1219 = vst.msk [vmem:[#allocation2] sm:$0xff] %vm1218_vm3, %v1216_v27 }
 0x8c5   : > { %v1391_v28 = vpop.permute.xlu0 %1390 }
 0x8c6   : > { %1394 = vst.msk [vmem:[#allocation2] sm:$0xff] %vm1393_vm4, %v1391_v28 }
 0x8cb   : > { %v2226_v29 = vpop.eup %2225 }
 0x8cc   : > { %v1480_v30 = vsel %vm880_vm2, %v2226_v29, 0.0 }
 0x8cd   : > { %1481 = vadd.xlane.f32.xlu1 %v1480_v30 }
 0x956   : > { %v1482_v31 = vpop.xlane.xlu1 %1481 }
 0x957   : > { %2227 = vrcp.f32 %v1482_v31 }
 0x964   : > { %v2228_v32 = vpop.eup %2227 }
 0x965   : > { %v1484_v33 = vmul.f32 %v2228_v32, %v2226_v29 }
 0x967   : > { %v1486_v35 = vadd.f32 %v1485_v34, %v1484_v33  ;;  %2072 = vmatmul.mubr.msk.f32.vlgmr.msra.gmra.mxu1 %vm880_vm2, %v1484_v33 }
 0x969   : > { %1487 = vst.msk [vmem:[%s2918_s29] sm:$0xff] %vm880_vm2, %v1486_v35 }
 0x970   : > { %v1668_v36 = vld [vmem:[%s2918_s29] sm:$0xff] }
 0x971   : > { %v1669_v37 = vmul.f32 0.25, %v1668_v36 }
 0x973   : > { %1670 = vst.msk [vmem:[%s2918_s29] sm:$0xff] %vm880_vm2, %v1669_v37 }
 0xa27   : > { %v1560_v42 = vpop.f32.mrf.mxu1 }
 0xa28   : > { %1565 = vrot.lane.b32.xlu0 %v1560_v42, %s2557_s15 }
 0xa29   : > { %v2073_v43 = vpop.f32.mrf.mxu1 }
 0xa9a   : > { %v1566_v44 = vpop.permute.xlu0 %1565 }
 0xa9b   : > { %1569 = vst.msk [vmem:[#allocation2] sm:$0xff] %vm1568_vm5, %v1566_v44 }
 0xaa2   : > { %v1570_v45 = vld [vmem:[#allocation2] sm:$0xff] }
 0xaa3   : > { %2083 = vmatmul.mubr.msk.f32.vlgmr.msra.gmra.mxu0 %vm602_vm1, %v1570_v45 }
 0xaa4   : > { %2430 = shalt.err (!%p2427_p4)
}
 0xaa5   : > { %s2431_s10 = scalar_lea.hbm %s1703_s11, 128  ;;  %s2435_s21 = scalar_lea.hbm %s3128_s7, 256 }
 0xaa6   : > { %p2432_p8 = scmp.ne.s32.totalorder %s1703_s11, %s2431_s10  ;;  %p2436_p0 = scmp.lt.s32.totalorder %s1703_s11, %s3128_s7 }
 0xaa7   : > { %p2437_p13 = scmp.lt.s32.totalorder %s2435_s21, %s2431_s10 }
 0xaa8   : > { %p2433_p6 = pnand %p2432_p8, %p3129_p12 }
 0xaa9   : > { %p2438_p9 = por %p2437_p13, %p2436_p0 }
 0xaaa   : > { %p2434_p3 = pneg %p2433_p6 }
 0xaac   : > { %p2439_p11 = pnand %p2438_p9, %p2434_p3 }
 0xaae   : > { %2442 = shalt.err (!%p2439_p11)
}
 0xaaf   : > { %2108 = dma.vmem_to_hbm [thread:$0]  (%p3129_p12), %s1706_s28, 128, %s1703_s11, %s1677_s27  }
 0xab0   : > { %s3130_s18 = sld [smem:[#allocation35_spill]]  ;;  %s580_s5 = scalar_lea.vmem [#allocation15], %s2819_s26 }
 0xab1   : > { %s1691_s14 = sshll.u32 %s580_s5, 4  ;;  %s3131_s3 = sld [smem:[#allocation36_spill]]  ;;  %s1692_s14 = int_to_ptr.vmem [resolvable:$true] %s1691_s14 }
 0xab2   : > { %s1672_s12 = scalar_lea.sflag [#allocation5], %s2816_s30  ;;  %s2443_s11 = scalar_lea.vmem %s1692_s14, 128 }
 0xab3   : > { %p2444_p2 = scmp.ne.s32.totalorder %s1692_s14, %s2443_s11  ;;  %s2559_s26 = smov [#allocation15]  }
 0xab4   : > { %s2447_s28 = sshll.u32 %s2559_s26, 4  ;;  %s2448_s28 = int_to_ptr.vmem [resolvable:$false] %s2447_s28 }
 0xab5   : > { %p2445_p5 = pnand %p2444_p2, %p3129_p12  ;;  %s2449_s27 = scalar_lea.vmem %s2448_s28, 256 }
 0xab6   : > { %v1953_v0 = vld [vmem:[%s3130_s18] ss:$0 sm:$0xff]  ;;  %p2450_p1 = scmp.lt.s32.totalorder %s1692_s14, %s2448_s28  ;;  %p2451_p7 = scmp.lt.s32.totalorder %s2449_s27, %s2443_s11 }
 0xab7   : > { %s3016_s10 = scalar_lea.hbm %s3131_s3, %s1961_s19  ;;  %p2446_p10 = pneg %p2445_p5 }
 0xab8   : > { %p2452_p4 = por %p2451_p7, %p2450_p1 }
 0xaba   : > { %p2453_p8 = pnand %p2452_p4, %p2446_p10 }
 0xb63   : > { %v1663_v46 = vpop.f32.mrf.mxu0 }
 0xb64   : > { %v1664_v47 = vadd.f32 %v1953_v0, %v1663_v46 }
 0xb65   : > { %v2084_v48 = vpop.f32.mrf.mxu0 }
 0xb66   : > { %1667 = vst.msk [vmem:[%s580_s5] sm:$0xff] %vm602_vm1, %v1664_v47 }
 0xb67   : > { %2456 = shalt.err (!%p2453_p8)
}
 0xb68   : > { %s2457_s24 = scalar_lea.hbm %s3016_s10, 128  ;;  %s2461_s29 = scalar_lea.hbm %s3131_s3, 256 }
 0xb69   : > { %p2458_p6 = scmp.ne.s32.totalorder %s3016_s10, %s2457_s24  ;;  %p2462_p13 = scmp.lt.s32.totalorder %s3016_s10, %s3131_s3 }
 0xb6a   : > { %p2463_p9 = scmp.lt.s32.totalorder %s2461_s29, %s2457_s24 }
 0xb6b   : > { %p2459_p3 = pnand %p2458_p6, %p3129_p12 }
 0xb6c   : > { %p2464_p11 = por %p2463_p9, %p2462_p13 }
 0xb6d   : > { %p2460_p0 = pneg %p2459_p3 }
 0xb6f   : > { %p2465_p2 = pnand %p2464_p11, %p2460_p0 }
 0xb71   : > { %2468 = shalt.err (!%p2465_p2)
}
 0xb72   : > { %2107 = dma.vmem_to_hbm [thread:$0]  (%p3129_p12), %s1692_s14, 128, %s3016_s10, %s1672_s12  }
 0xb73 PF: > { %s3132_s25 = sld [smem:[#allocation24_spill]] }
 0xb74   : > { %s3133_s13 = sld [smem:[#allocation30_spill]] }
 0xb75   : > { %s3134_s15 = sld [smem:[#allocation26_spill]] }
 0xb79   : > { %s1717_s18 = sand.u32 1, %s3132_s25  }
 0xb7a   : > { %p3135_p5 = scmp.ne.s32.totalorder %s3133_s13, 0  ;;  %s1718_s5 = scalar_lea.sflag [#allocation5], %s1717_s18 }
 0xb7b   : > { %p3136_p10 = scmp.ge.s32.totalorder %s3134_s15, 2 }
 0xb7d   : > { %p2135_p1 = pnand %p3136_p10, %p3135_p5 }
 0xb7f   : > { %p2136_p7 = pneg %p2135_p1 }
 0xb81   : > { %2510 = dma.done.wait (%p2136_p7), %s1718_s5, 128  }
 0xb82   : > { %2512 = vsyncadd (%p2136_p7), %s1718_s5, 4294967168  ;;  %s1727_s1 = scalar_lea.sflag [#allocation17], %s1717_s18 }
 0xb83   : > { %2514 = dma.done.wait (%p2136_p7), %s1727_s1, 128  }
 0xb84   : > { %2516 = vsyncadd (%p2136_p7), %s1727_s1, 4294967168  ;;  %s37_s26 = sadd.s32 1, %s3134_s15   ;;  %s3137_s16 = sld [smem:[#allocation29_spill]] }
 0xb85   : > { %p34_p4 = scmp.ge.s32.totalorder %s37_s26, 4   ;;  %s3138_s24 = sld [smem:[#allocation25_spill]] }
 0xb86   : > { %s3139_s25 = sld [smem:[#allocation27_spill]]  ;;  %s3140_s21 = smov %s2523_s22 }
 0xb87   : > { %s3141_s22 = smov %s2527_s23  ;;  %36 = sbr.rel (!%p34_p4) target bundleno = 20 (0x14), region = 166 }
 0xb8a   : > { %s3142_s23 = smov %s3137_s16 }
 0xb8c   :  { %1732 = vsyncpa [#allocation4], 1 }
 0xb8d   :  { %1734 = vsyncpa [#allocation4 + $0x1], 1 }
 0xb8e   :  { %1735 = vsyncpa [#allocation7], 1 }
 0xb8f   :  { %1737 = vsyncpa [#allocation7 + $0x1], 1 }
 0xb90   :  { %1738 = vsyncpa [#allocation10], 1 }
 0xb91   :  { %1739 = vsyncpa [#allocation13], 1 }
 0xb92   :  { %1740 = vsyncpa [#allocation5], 1 }
 0xb93   :  { %1742 = vsyncpa [#allocation5 + $0x1], 1 }
 0xb94   :  { %1743 = vsyncpa [#allocation17], 1 }
 0xb95   :  { %1745 = vsyncpa [#allocation17 + $0x1], 1 }

</bundles_post_ra>
